<compile_context>
chip_gen: v6e
topology: v6e:2x2x1
jax: 0.10.0
libtpu: 0.0.40
codegen_flags: <defaults>
</compile_context>

<pallas_src>
import functools

import jax
import jax.numpy as jnp
from jax import lax
from jax.experimental import pallas as pl
from jax.experimental.pallas import tpu as pltpu

# ----------------------------- config (small, consistent with the module) -----------------------------
EMBED_DIM = 32      # config.embed_dim
NUM_EXPERTS = 4     # config.num_experts
TOP_K = 2           # config.num_selected_experts
BATCH = 2
SEQ_LEN = 16        # symbol sequence length


def _round_up(x, m):
    return ((x + m - 1) // m) * m


# ----------------------------- the fused Pallas kernel -----------------------------
def _selective_embedding_kernel(h_ref, gw_ref, gb_ref, ws_ref, o_ref, *, top_k):
    """One grid step = one tile of `bt` tokens.

    h_ref : (bt, D)    token embeddings
    gw_ref: (D, E)     gate weight
    gb_ref: (1, E)     gate bias
    ws_ref: (E*D, D)   expert weights stacked along the contraction axis (K = E*D = 128)
    o_ref : (bt, D)    routed expert mix
    """
    D = h_ref.shape[1]
    E = gw_ref.shape[1]

    h = h_ref[...].astype(jnp.float32)                                            # (bt, D)

    # ---- gate linear + softmax over experts (fp32, like F.softmax(dtype=torch.float)) ----
    logits = jnp.dot(h, gw_ref[...], preferred_element_type=jnp.float32) + gb_ref[...]   # (bt, E)
    m = jnp.max(logits, axis=-1, keepdims=True)
    p = jnp.exp(logits - m)
    # exact reciprocal (approx=True flagged as a tie/tolerance risk in the review)
    probs = p * pl.reciprocal(jnp.sum(p, axis=-1, keepdims=True), approx=False)   # (bt, E)

    # ---- in-kernel top-k routing: k rounds of max extraction, ties -> lowest index ----
    # First-occurrence tie-break via masked index-min (VPU/XLU only; no MXU push on the
    # critical path, unlike the old prefix-count matmul).
    idx = lax.broadcasted_iota(jnp.int32, (probs.shape[0], E), 1)                 # (bt, E)
    route = jnp.zeros_like(probs)
    remaining = probs
    for _ in range(top_k):                                                        # unrolled (k = 2)
        cur_max = jnp.max(remaining, axis=-1, keepdims=True)                      # (bt, 1)
        is_max = remaining == cur_max
        masked_idx = jnp.where(is_max, idx, E)                                    # non-max -> E
        sel = jnp.min(masked_idx, axis=-1, keepdims=True)                         # lowest max index
        first = idx == sel
        route = jnp.where(first, probs, route)                                    # weight = raw prob
        remaining = jnp.where(first, -jnp.inf, remaining)

    # ---- expert mix: stack experts along K so the reduction happens inside the MXU ----
    # hw[t, e*D + d] = route[t, e] * h[t, d]   (lane-dense (bt, E*D = 128))
    hw = jnp.concatenate([route[:, e:e + 1] * h for e in range(E)], axis=-1)      # (bt, E*D)
    out = jnp.dot(hw, ws_ref[...], preferred_element_type=jnp.float32)            # (bt, D)

    o_ref[...] = out.astype(o_ref.dtype)


# ----------------------------- wrapper -----------------------------
def selective_embedding(params, e_symb, *, block_t=4096):
    """e_symb: (B, S, D) -> E_bias: (B, S, D)."""
    B, S, D = e_symb.shape
    E = params["gate_w"].shape[1]
    T = B * S
    h = e_symb.reshape(T, D)

    # experts (E, D, D) -> (E*D, D): expert e occupies rows [e*D, (e+1)*D) of the K axis.
    w_stack = params["expert_w"].reshape(E * D, D)

    # ---- token tiling: bounded tile + padding (no monolithic bt=T fallback) ----
    block_t = _round_up(max(int(block_t), 8), 8)          # keep the (8,128) sublane rule
    t8 = _round_up(T, 8)
    bt = min(block_t, t8)
    t_pad = _round_up(t8, bt)
    if t_pad != T:
        h = jnp.concatenate([h, jnp.zeros((t_pad - T, D), h.dtype)], axis=0)
    grid = (t_pad // bt,)                                  # >= 2 steps for large T -> megacore split

    out2d = pl.pallas_call(
        functools.partial(_selective_embedding_kernel, top_k=TOP_K),
        out_shape=jax.ShapeDtypeStruct((t_pad, D), e_symb.dtype),
        grid_spec=pltpu.PrefetchScalarGridSpec(
            num_scalar_prefetch=0,
            grid=grid,
            in_specs=[
                pl.BlockSpec((bt, D), lambda i: (i, 0)),        # tokens (tiled)
                pl.BlockSpec((D, E), lambda i: (0, 0)),         # gate weight (resident)
                pl.BlockSpec((1, E), lambda i: (0, 0)),         # gate bias (resident)
                pl.BlockSpec((E * D, D), lambda i: (0, 0)),     # stacked expert weights (resident)
            ],
            out_specs=pl.BlockSpec((bt, D), lambda i: (i, 0)),
        ),
        compiler_params=pltpu.CompilerParams(dimension_semantics=("parallel",)),
    )(h, params["gate_w"], params["gate_b"].reshape(1, E), w_stack)

    return out2d[:T].reshape(B, S, D)


# ----------------------------- pure-JAX reference (for correctness check) -----------------------------
def selective_embedding_ref(params, e_symb):
    B, S, D = e_symb.shape
    E = params["gate_w"].shape[1]
    h = e_symb.reshape(-1, D)
    T = h.shape[0]
    logits = jnp.dot(h, params["gate_w"], precision=lax.Precision.HIGHEST) + params["gate_b"]
    probs = jax.nn.softmax(logits.astype(jnp.float32), axis=-1)
    top_vals, top_idx = lax.top_k(probs, TOP_K)
    route = jnp.zeros((T, E), jnp.float32).at[jnp.arange(T)[:, None], top_idx].set(top_vals)
    y = jnp.einsum("td,edk->tek", h, params["expert_w"], precision=lax.Precision.HIGHEST)
    out = jnp.einsum("te,tek->tk", route, y, precision=lax.Precision.HIGHEST)
    return out.reshape(B, S, D).astype(e_symb.dtype)


# ----------------------------- deterministic parameter init -----------------------------
def init_params(key):
    kg, kb, ke = jax.random.split(key, 3)
    D, E = EMBED_DIM, NUM_EXPERTS
    limit = 1.0 / (D ** 0.5)                         # nn.Linear default init
    return {
        "gate_w": jax.random.uniform(kg, (D, E), jnp.float32, -limit, limit),
        "gate_b": jax.random.uniform(kb, (E,), jnp.float32, -limit, limit),
        "expert_w": jax.random.normal(ke, (E, D, D), jnp.float32),   # nn.Embedding default init N(0,1)
    }


# ----------------------------- main -----------------------------
if __name__ == "__main__":
    key = jax.random.PRNGKey(0)
    k_params, k_x, k_x2 = jax.random.split(key, 3)
    params = init_params(k_params)

    # --- primary small-shape check (matches the module's toy config) ---
    e_symb = jax.random.normal(k_x, (BATCH, SEQ_LEN, EMBED_DIM), jnp.float32)
    fwd = jax.jit(selective_embedding)
    e_bias = fwd(params, e_symb)
    jax.block_until_ready(e_bias)

    ref = selective_embedding_ref(params, e_symb)
    assert e_bias.shape == (BATCH, SEQ_LEN, EMBED_DIM)
    assert bool(jnp.all(jnp.isfinite(e_bias)))
    max_err = float(jnp.max(jnp.abs(e_bias - ref)))
    assert bool(jnp.allclose(e_bias, ref, rtol=2e-3, atol=2e-3)), max_err

    # --- secondary check: non-divisible T exercises padding + a multi-step "parallel" grid ---
    e_symb2 = jax.random.normal(k_x2, (3, 100, EMBED_DIM), jnp.float32)      # T = 300
    e_bias2 = jax.jit(functools.partial(selective_embedding, block_t=128))(params, e_symb2)
    jax.block_until_ready(e_bias2)
    ref2 = selective_embedding_ref(params, e_symb2)
    max_err2 = float(jnp.max(jnp.abs(e_bias2 - ref2)))
    assert bool(jnp.allclose(e_bias2, ref2, rtol=2e-3, atol=2e-3)), max_err2

    print("KERNEL_OK")
</pallas_src>

<mosaic_0001>
module attributes {stable_mosaic.version = 11 : i64} {
  func.func @_selective_embedding_kernel(%arg0: i32, %arg1: memref<32x32xf32, #tpu.memory_space<vmem>>, %arg2: memref<32x4xf32, #tpu.memory_space<vmem>>, %arg3: memref<1x4xf32, #tpu.memory_space<vmem>>, %arg4: memref<128x32xf32, #tpu.memory_space<vmem>>, %arg5: memref<32x32xf32, #tpu.memory_space<vmem>>) attributes {dimension_semantics = [#tpu.dimension_semantics<parallel>], iteration_bounds = array<i64: 1>, scalar_prefetch = 0 : i64, scratch_operands = 0 : i64, tpu.core_type = #tpu.core_type<tc>, window_params = [{transform_indices = @transform_0, window_bounds = array<i64: 32, 32>}, {pipeline_mode = #tpu.pipeline_mode<synchronous>, transform_indices = @transform_1, window_bounds = array<i64: 32, 4>}, {pipeline_mode = #tpu.pipeline_mode<synchronous>, transform_indices = @transform_2, window_bounds = array<i64: 1, 4>}, {pipeline_mode = #tpu.pipeline_mode<synchronous>, transform_indices = @transform_3, window_bounds = array<i64: 128, 32>}, {transform_indices = @transform_4, window_bounds = array<i64: 32, 32>}]} {
    %c0 = arith.constant 0 : index
    %c0_0 = arith.constant 0 : index
    %0 = vector.load %arg1[%c0, %c0_0] : memref<32x32xf32, #tpu.memory_space<vmem>>, vector<32x32xf32>
    %c0_1 = arith.constant 0 : index
    %c0_2 = arith.constant 0 : index
    %1 = vector.load %arg2[%c0_1, %c0_2] : memref<32x4xf32, #tpu.memory_space<vmem>>, vector<32x4xf32>
    %cst = arith.constant dense<0.000000e+00> : vector<32x4xf32>
    %2 = tpu.matmul %0, %1, %cst {dimension_numbers = #tpu.dot_dimension_numbers<[1], [0], [0], [1], [0, 0, 1, 1], [], []>} : vector<32x32xf32>, vector<32x4xf32>, vector<32x4xf32> -> vector<32x4xf32>
    %c0_3 = arith.constant 0 : index
    %c0_4 = arith.constant 0 : index
    %3 = vector.load %arg3[%c0_3, %c0_4] : memref<1x4xf32, #tpu.memory_space<vmem>>, vector<1x4xf32>
    %4 = vector.broadcast %3 : vector<1x4xf32> to vector<32x4xf32>
    %5 = arith.addf %2, %4 : vector<32x4xf32>
    %cst_5 = arith.constant dense<0xFF800000> : vector<32xf32>
    %6 = vector.multi_reduction <maximumf>, %5, %cst_5 [1] : vector<32x4xf32> to vector<32xf32>
    %7 = vector.shape_cast %6 : vector<32xf32> to vector<32x1xf32>
    %8 = vector.broadcast %7 : vector<32x1xf32> to vector<32x4xf32>
    %9 = arith.subf %5, %8 : vector<32x4xf32>
    %10 = math.exp %9 : vector<32x4xf32>
    %cst_6 = arith.constant dense<0.000000e+00> : vector<32xf32>
    %11 = vector.multi_reduction <add>, %10, %cst_6 [1] : vector<32x4xf32> to vector<32xf32>
    %12 = vector.shape_cast %11 : vector<32xf32> to vector<32x1xf32>
    %13 = tpu.reciprocal %12 : vector<32x1xf32> -> vector<32x1xf32>
    %14 = vector.broadcast %13 : vector<32x1xf32> to vector<32x4xf32>
    %15 = arith.mulf %10, %14 : vector<32x4xf32>
    %16 = tpu.iota {dimensions = array<i32: 1>} : vector<32x4xi32>
    %cst_7 = arith.constant 0.000000e+00 : f32
    %17 = vector.broadcast %cst_7 : f32 to vector<32x4xf32>
    %cst_8 = arith.constant dense<0xFF800000> : vector<32xf32>
    %18 = vector.multi_reduction <maximumf>, %15, %cst_8 [1] : vector<32x4xf32> to vector<32xf32>
    %19 = vector.shape_cast %18 : vector<32xf32> to vector<32x1xf32>
    %20 = vector.broadcast %19 : vector<32x1xf32> to vector<32x4xf32>
    %21 = arith.cmpf oeq, %15, %20 : vector<32x4xf32>
    %c4_i32 = arith.constant 4 : i32
    %22 = vector.broadcast %c4_i32 : i32 to vector<32x4xi32>
    %23 = arith.select %21, %16, %22 : vector<32x4xi1>, vector<32x4xi32>
    %cst_9 = arith.constant dense<2147483647> : vector<32xi32>
    %24 = vector.multi_reduction <minsi>, %23, %cst_9 [1] : vector<32x4xi32> to vector<32xi32>
    %25 = vector.shape_cast %24 : vector<32xi32> to vector<32x1xi32>
    %26 = vector.broadcast %25 : vector<32x1xi32> to vector<32x4xi32>
    %27 = arith.cmpi eq, %16, %26 : vector<32x4xi32>
    %28 = arith.select %27, %15, %17 : vector<32x4xi1>, vector<32x4xf32>
    %cst_10 = arith.constant 0xFF800000 : f32
    %29 = vector.broadcast %cst_10 : f32 to vector<32x4xf32>
    %30 = arith.select %27, %29, %15 : vector<32x4xi1>, vector<32x4xf32>
    %cst_11 = arith.constant dense<0xFF800000> : vector<32xf32>
    %31 = vector.multi_reduction <maximumf>, %30, %cst_11 [1] : vector<32x4xf32> to vector<32xf32>
    %32 = vector.shape_cast %31 : vector<32xf32> to vector<32x1xf32>
    %33 = vector.broadcast %32 : vector<32x1xf32> to vector<32x4xf32>
    %34 = arith.cmpf oeq, %30, %33 : vector<32x4xf32>
    %c4_i32_12 = arith.constant 4 : i32
    %35 = vector.broadcast %c4_i32_12 : i32 to vector<32x4xi32>
    %36 = arith.select %34, %16, %35 : vector<32x4xi1>, vector<32x4xi32>
    %cst_13 = arith.constant dense<2147483647> : vector<32xi32>
    %37 = vector.multi_reduction <minsi>, %36, %cst_13 [1] : vector<32x4xi32> to vector<32xi32>
    %38 = vector.shape_cast %37 : vector<32xi32> to vector<32x1xi32>
    %39 = vector.broadcast %38 : vector<32x1xi32> to vector<32x4xi32>
    %40 = arith.cmpi eq, %16, %39 : vector<32x4xi32>
    %41 = arith.select %40, %15, %28 : vector<32x4xi1>, vector<32x4xf32>
    %42 = vector.extract_strided_slice %41 {offsets = [0, 0], sizes = [32, 1], strides = [1, 1]} : vector<32x4xf32> to vector<32x1xf32>
    %43 = vector.broadcast %42 : vector<32x1xf32> to vector<32x32xf32>
    %44 = arith.mulf %43, %0 : vector<32x32xf32>
    %45 = vector.extract_strided_slice %41 {offsets = [0, 1], sizes = [32, 1], strides = [1, 1]} : vector<32x4xf32> to vector<32x1xf32>
    %46 = vector.broadcast %45 : vector<32x1xf32> to vector<32x32xf32>
    %47 = arith.mulf %46, %0 : vector<32x32xf32>
    %48 = vector.extract_strided_slice %41 {offsets = [0, 2], sizes = [32, 1], strides = [1, 1]} : vector<32x4xf32> to vector<32x1xf32>
    %49 = vector.broadcast %48 : vector<32x1xf32> to vector<32x32xf32>
    %50 = arith.mulf %49, %0 : vector<32x32xf32>
    %51 = vector.extract_strided_slice %41 {offsets = [0, 3], sizes = [32, 1], strides = [1, 1]} : vector<32x4xf32> to vector<32x1xf32>
    %52 = vector.broadcast %51 : vector<32x1xf32> to vector<32x32xf32>
    %53 = arith.mulf %52, %0 : vector<32x32xf32>
    %54 = tpu.concatenate %44, %47, %50, %53 in 1 : vector<32x32xf32>, vector<32x32xf32>, vector<32x32xf32>, vector<32x32xf32> -> vector<32x128xf32>
    %c0_14 = arith.constant 0 : index
    %c0_15 = arith.constant 0 : index
    %55 = vector.load %arg4[%c0_14, %c0_15] : memref<128x32xf32, #tpu.memory_space<vmem>>, vector<128x32xf32>
    %cst_16 = arith.constant dense<0.000000e+00> : vector<32x32xf32>
    %56 = tpu.matmul %54, %55, %cst_16 {dimension_numbers = #tpu.dot_dimension_numbers<[1], [0], [0], [1], [0, 0, 1, 1], [], []>} : vector<32x128xf32>, vector<128x32xf32>, vector<32x32xf32> -> vector<32x32xf32>
    %c0_17 = arith.constant 0 : index
    %c0_18 = arith.constant 0 : index
    %57 = vector.load %arg5[%c0_17, %c0_18] : memref<32x32xf32, #tpu.memory_space<vmem>>, vector<32x32xf32>
    tpu.vector_store %arg5[%c0_17, %c0_18], %56 {strides = array<i32>} : memref<32x32xf32, #tpu.memory_space<vmem>>, vector<32x32xf32>,
    return
  }
  func.func @transform_0(%arg0: i32) -> (i32, i32) {
    %c0_i32 = arith.constant 0 : i32
    %c0_i32_0 = arith.constant 0 : i32
    return %arg0, %c0_i32 : i32, i32
  }
  func.func @transform_1(%arg0: i32) -> (i32, i32) {
    %c0_i32 = arith.constant 0 : i32
    %c0_i32_0 = arith.constant 0 : i32
    %c0_i32_1 = arith.constant 0 : i32
    return %c0_i32, %c0_i32_0 : i32, i32
  }
  func.func @transform_2(%arg0: i32) -> (i32, i32) {
    %c0_i32 = arith.constant 0 : i32
    %c0_i32_0 = arith.constant 0 : i32
    %c0_i32_1 = arith.constant 0 : i32
    return %c0_i32, %c0_i32_0 : i32, i32
  }
  func.func @transform_3(%arg0: i32) -> (i32, i32) {
    %c0_i32 = arith.constant 0 : i32
    %c0_i32_0 = arith.constant 0 : i32
    %c0_i32_1 = arith.constant 0 : i32
    return %c0_i32, %c0_i32_0 : i32, i32
  }
  func.func @transform_4(%arg0: i32) -> (i32, i32) {
    %c0_i32 = arith.constant 0 : i32
    %c0_i32_0 = arith.constant 0 : i32
    return %arg0, %c0_i32 : i32, i32
  }
}

</mosaic_0001>

<bundles_post_ra>
// kernel: selective_embedding.1
= control target key start
LH: loop header
LB: loop body
LE: loop exit
PB: predicated region body
PF: predicated region fallthrough
CT: control target
= control target key end

     0   :  { %9 = vsyncpa [#allocation3], 0  ;;  %s1074_s0 = inlined_call_operand.vmem [shape: f32[32,32], index: 0, kind: input, shape index: {}]   ;;  %s1075_s1 = inlined_call_operand.vmem [shape: f32[32,4], index: 1, kind: input, shape index: {}]   ;;  %s1076_s2 = inlined_call_operand.vmem [shape: f32[1,4], index: 2, kind: input, shape index: {}]   ;;  %s1077_s3 = inlined_call_operand.hbm [shape: f32[128,32], index: 3, kind: input, shape index: {}]   ;;  %s1078_s4 = inlined_call_operand.hbm [shape: f32[32,32], index: 4, kind: output, shape index: {}]  }
   0x1   :  { %10 = vsyncpa [#allocation4], 0  ;;  %s839_s15 = smov [#allocation2]  }
   0x2   :  { %s22_s16 = sshll.u32 %s839_s15, 4  ;;  %s23_s16 = int_to_ptr.vmem [resolvable:$true] %s22_s16 }
   0x3   :  { %s803_s17 = scalar_lea.vmem %s23_s16, 2048  ;;  %p808_p1 = scmp.lt.s32.totalorder %s23_s16, %s23_s16 }
   0x4   :  { %p804_p0 = scmp.ne.s32.totalorder %s23_s16, %s803_s17  ;;  %p809_p2 = scmp.lt.s32.totalorder %s803_s17, %s803_s17 }
   0x6   :  { %p810_p3 = por %p809_p2, %p808_p1 }
   0x8   :  { %p811_p4 = pnand %p810_p3, %p804_p0 }
   0xa   :  { %814 = shalt.err (!%p811_p4)
}
   0xb   :  { %s840_s18 = smov 128   ;;  %s841_s19 = smov 8  }
   0xc   :  { %28 = dma.hbm_to_vmem [thread:$0]  %s1077_s3, 2048, %s23_s16, [#allocation3], %s840_s18, %s840_s18, %s841_s19  }
   0xd   :  { %835 = dma.done.wait [#allocation3], 2048  }
   0xe   :  { %836 = vsyncadd [#allocation3], 4294965248  ;;  %vm47_vm0 = vcmask 261120   ;;  %v39_v0 = vld [vmem:[%s1075_s1 + $0x18] sm:$0xff]  ;;  %v38_v1 = vld [vmem:[%s1075_s1 + $0x10] sm:$0xff]  ;;  %vm145_vm1 = vcmask 31744   ;;  %v190_v57 = vlaneseq }
   0xf   :  { %673 = vmatprep.subr.mxu0 %v39_v0  ;;  %v890_v2 = vld [vmem:[%s1074_s0] sm:$0xff]  ;;  %v37_v3 = vld [vmem:[%s1075_s1 + $0x8] sm:$0xff]  ;;  %v908_v6 = vld [vmem:[%s1074_s0 + $0x10] sm:$0xff]  ;;  %s848_s12 = smov 96   ;;  %s849_s13 = smov [#allocation5]  }
  0x10   :  { %674 = vmatpush3.msra.mxu0 %v39_v0  ;;  %681 = vmatprep.mubr.msk.f32.mxu0 %vm47_vm0, %v890_v2  ;;  %v36_v4 = vld [vmem:[%s1075_s1] sm:$0xff]  ;;  %v903_v5 = vld [vmem:[%s1074_s0 + $0x8] sm:$0xff]  ;;  %v917_v7 = vld [vmem:[%s1074_s0 + $0x18] sm:$0xff]  ;;  %v948_v58 = vand.u32 127, %v190_v57  ;;  %s846_s0 = smov 32   ;;  %s628_s14 = sshll.u32 %s849_s13, 4  ;;  %s629_s14 = int_to_ptr.vmem [resolvable:$true] %s628_s14 }
  0x11   :  { %675 = vmatprep.subr.mxu0 %v38_v1  ;;  %v640_v9 = vld [vmem:[%s1076_s2] ss:$0 sm:$0xff]  ;;  %s847_s2 = smov 64   ;;  %s815_s15 = scalar_lea.vmem %s629_s14, 512 }
  0x12   :  { %676 = vmatpush3.msra.mxu0 %v38_v1  ;;  %p816_p5 = scmp.ne.s32.totalorder %s629_s14, %s815_s15  ;;  %p820_p6 = scmp.lt.s32.totalorder %s629_s14, %s629_s14 }
  0x13   :  { %677 = vmatprep.subr.mxu0 %v37_v3  ;;  %p821_p7 = scmp.lt.s32.totalorder %s815_s15, %s815_s15 }
  0x14   :  { %678 = vmatpush3.msra.mxu0 %v37_v3 }
  0x15   :  { %679 = vmatprep.subr.mxu0 %v36_v4  ;;  %p822_p8 = por %p821_p7, %p820_p6 }
  0x16   :  { %680 = vmatpush3.msra.mxu0 %v36_v4 }
  0x17   :  { %682 = vmatmul.mubr.msk.f32.vlgmr.msra.gmra.mxu0 %vm47_vm0, %v903_v5  ;;  %p823_p9 = pnand %p822_p8, %p816_p5 }
  0x18   :  { %684 = vmatprep.mubr.msk.f32.mxu0 %vm47_vm0, %v908_v6 }
  0x1b   :  { %685 = vmatmul.mubr.msk.f32.gmra.mxu0 %vm47_vm0, %v917_v7 }
  0xd7   :  { %v683_v8 = vpop.f32.mrf.mxu0 }
  0xd8   :  { %v132_v13 = vadd.f32 %v683_v8, %v640_v9 }
  0xd9   :  { %v126_v10 = vpop.f32.mrf.mxu0 }
  0xda   :  { %v127_v11 = vadd.f32 %v640_v9, %v126_v10  ;;  %v149_v19 = vsel %vm145_vm1, %v132_v13, -inf }
  0xdb   :  { %v686_v12 = vpop.f32.mrf.mxu0 }
  0xdc   :  { %v146_v14 = vsel %vm145_vm1, %v127_v11, -inf  ;;  %v142_v16 = vadd.f32 %v686_v12, %v640_v9 }
  0xdd   :  { %v136_v15 = vpop.f32.mrf.mxu0  ;;  %147 = vmax.xlane.f32.xlu0 %v146_v14 }
  0xde   :  { %v137_v17 = vadd.f32 %v640_v9, %v136_v15  ;;  %v155_v20 = vsel %vm145_vm1, %v142_v16, -inf }
  0xe0   :  { %v152_v18 = vsel %vm145_vm1, %v137_v17, -inf }
  0xe1   :  { %153 = vmax.xlane.f32.xlu1 %v152_v18  ;;  %150 = vmax.xlane.f32.xlu0 %v149_v19 }
  0xe5   :  { %156 = vmax.xlane.f32.xlu1 %v155_v20 }
 0x166   :  { %v148_v21 = vpop.xlane.xlu0 %147 }
 0x167   :  { %v158_v22 = vsub.f32 %v127_v11, %v148_v21 }
 0x169   :  { %v162_v23 = vmul.f32 1.442695, %v158_v22 }
 0x16a   :  { %v154_v24 = vpop.xlane.xlu1 %153  ;;  %v151_v25 = vpop.xlane.xlu0 %150 }
 0x16b   :  { %779 = vpow2.f32 %v162_v23  ;;  %v160_v26 = vsub.f32 %v137_v17, %v154_v24  ;;  %v159_v27 = vsub.f32 %v132_v13, %v151_v25 }
 0x16d   :  { %v166_v28 = vmul.f32 1.442695, %v160_v26  ;;  %v164_v29 = vmul.f32 1.442695, %v159_v27 }
 0x16e   :  { %v157_v30 = vpop.xlane.xlu1 %156 }
 0x16f   :  { %781 = vpow2.f32 %v166_v28  ;;  %v161_v31 = vsub.f32 %v142_v16, %v157_v30 }
 0x170   :  { %783 = vpow2.f32 %v164_v29 }
 0x171   :  { %v168_v32 = vmul.f32 1.442695, %v161_v31 }
 0x173   :  { %785 = vpow2.f32 %v168_v32 }
 0x178   :  { %v780_v33 = vpop.eup %779 }
 0x179   :  { %v170_v34 = vsel %vm145_vm1, %v780_v33, 0.0 }
 0x17a   :  { %171 = vadd.xlane.f32.xlu0 %v170_v34 }
 0x17c   :  { %v782_v35 = vpop.eup %781 }
 0x17d   :  { %v784_v36 = vpop.eup %783  ;;  %v176_v37 = vsel %vm145_vm1, %v782_v35, 0.0 }
 0x17e   :  { %177 = vadd.xlane.f32.xlu0 %v176_v37  ;;  %v173_v38 = vsel %vm145_vm1, %v784_v36, 0.0 }
 0x17f   :  { %174 = vadd.xlane.f32.xlu1 %v173_v38 }
 0x180   :  { %v786_v39 = vpop.eup %785 }
 0x181   :  { %v179_v40 = vsel %vm145_vm1, %v786_v39, 0.0 }
 0x183   :  { %180 = vadd.xlane.f32.xlu1 %v179_v40 }
 0x203   :  { %v172_v41 = vpop.xlane.xlu0 %171 }
 0x204   :  { %787 = vrcp.f32 %v172_v41 }
 0x207   :  { %v178_v42 = vpop.xlane.xlu0 %177 }
 0x208   :  { %v175_v43 = vpop.xlane.xlu1 %174  ;;  %789 = vrcp.f32 %v178_v42 }
 0x209   :  { %791 = vrcp.f32 %v175_v43 }
 0x20c   :  { %v181_v44 = vpop.xlane.xlu1 %180 }
 0x20d   :  { %793 = vrcp.f32 %v181_v44 }
 0x211   :  { %v788_v45 = vpop.eup %787 }
 0x212   :  { %v932_v46 = vmul.f32 %v788_v45, %v780_v33 }
 0x214   :  { %v192_v47 = vsel %vm145_vm1, %v932_v46, -inf }
 0x215   :  { %v790_v48 = vpop.eup %789  ;;  %193 = vmax.xlane.f32.xlu0 %v192_v47 }
 0x216   :  { %v792_v49 = vpop.eup %791  ;;  %v936_v50 = vmul.f32 %v790_v48, %v782_v35 }
 0x217   :  { %v938_v51 = vmul.f32 %v792_v49, %v784_v36 }
 0x218   :  { %v198_v52 = vsel %vm145_vm1, %v936_v50, -inf }
 0x219   :  { %v195_v53 = vsel %vm145_vm1, %v938_v51, -inf  ;;  %199 = vmax.xlane.f32.xlu0 %v198_v52 }
 0x21a   :  { %v794_v54 = vpop.eup %793  ;;  %196 = vmax.xlane.f32.xlu1 %v195_v53 }
 0x21b   :  { %v944_v55 = vmul.f32 %v794_v54, %v786_v39 }
 0x21d   :  { %v201_v56 = vsel %vm145_vm1, %v944_v55, -inf }
 0x21e   :  { %202 = vmax.xlane.f32.xlu1 %v201_v56 }
 0x29e   :  { %v194_v59 = vpop.xlane.xlu0 %193 }
 0x29f   :  { %vm204_vm2 = vcmp.eq.f32.partialorder %v932_v46, %v194_v59 }
 0x2a0   :  { %v208_v60 = vsel %vm204_vm2, %v948_v58, 4 }
 0x2a1   :  { %v212_v61 = vsel %vm145_vm1, %v208_v60, 2147483647 }
 0x2a2   :  { %v200_v62 = vpop.xlane.xlu0 %199  ;;  %v214_v63 = vshra.s32 %v212_v61, 16  ;;  %v213_v19 = vand.u32 65535, %v212_v61 }
 0x2a3   :  { %v197_v0 = vpop.xlane.xlu1 %196  ;;  %vm206_vm3 = vcmp.eq.f32.partialorder %v936_v50, %v200_v62 }
 0x2a4   :  { %vm205_vm4 = vcmp.eq.f32.partialorder %v938_v51, %v197_v0  ;;  %v210_v1 = vsel %vm206_vm3, %v948_v58, 4  ;;  %v216_v3 = vcvt.s32.f32 %v214_v63  ;;  %v215_v21 = vcvt.s32.f32 %v213_v19 }
 0x2a5   :  { %v209_v4 = vsel %vm205_vm4, %v948_v58, 4  ;;  %v242_v8 = vsel %vm145_vm1, %v210_v1, 2147483647 }
 0x2a6   :  { %v227_v9 = vsel %vm145_vm1, %v209_v4, 2147483647  ;;  %217 = vmin.xlane.f32.xlu0 %v216_v3  ;;  %v244_v10 = vshra.s32 %v242_v8, 16  ;;  %v243_v22 = vand.u32 65535, %v242_v8 }
 0x2a7   :  { %v203_v11 = vpop.xlane.xlu1 %202  ;;  %v229_v12 = vshra.s32 %v227_v9, 16  ;;  %v228_v23 = vand.u32 65535, %v227_v9 }
 0x2a8   :  { %vm207_vm5 = vcmp.eq.f32.partialorder %v944_v55, %v203_v11  ;;  %v246_v13 = vcvt.s32.f32 %v244_v10  ;;  %v245_v26 = vcvt.s32.f32 %v243_v22 }
 0x2a9   :  { %v211_v14 = vsel %vm207_vm5, %v948_v58, 4  ;;  %v231_v15 = vcvt.s32.f32 %v229_v12  ;;  %v230_v28 = vcvt.s32.f32 %v228_v23 }
 0x2aa   :  { %v257_v16 = vsel %vm145_vm1, %v211_v14, 2147483647  ;;  %247 = vmin.xlane.f32.xlu0 %v246_v13 }
 0x2ab   :  { %232 = vmin.xlane.f32.xlu1 %v231_v15  ;;  %v259_v17 = vshra.s32 %v257_v16, 16  ;;  %v258_v29 = vand.u32 65535, %v257_v16 }
 0x2ad   :  { %v261_v18 = vcvt.s32.f32 %v259_v17  ;;  %v260_v33 = vcvt.s32.f32 %v258_v29 }
 0x2af   :  { %262 = vmin.xlane.f32.xlu1 %v261_v18 }
 0x32f   :  { %v218_v20 = vpop.xlane.xlu0 %217 }
 0x330   :  { %vm219_vm6 = vcmp.eq.f32.partialorder %v216_v3, %v218_v20  ;;  %v224_v35 = vcvt.f32.s32 %v218_v20 }
 0x331   :  { %v220_v24 = vsel %vm219_vm6, %v215_v21, inf }
 0x332   :  { %221 = vmin.xlane.f32.xlu0 %v220_v24  ;;  %v225_v37 = vshll.u32 %v224_v35, 16 }
 0x333   :  { %v248_v25 = vpop.xlane.xlu0 %247 }
 0x334   :  { %v233_v27 = vpop.xlane.xlu1 %232  ;;  %vm249_vm7 = vcmp.eq.f32.partialorder %v246_v13, %v248_v25  ;;  %v254_v38 = vcvt.f32.s32 %v248_v25 }
 0x335   :  { %vm234_vm8 = vcmp.eq.f32.partialorder %v231_v15, %v233_v27  ;;  %v250_v30 = vsel %vm249_vm7, %v245_v26, inf  ;;  %v239_v40 = vcvt.f32.s32 %v233_v27 }
 0x336   :  { %v235_v31 = vsel %vm234_vm8, %v230_v28, inf  ;;  %251 = vmin.xlane.f32.xlu0 %v250_v30  ;;  %v255_v43 = vshll.u32 %v254_v38, 16 }
 0x337   :  { %236 = vmin.xlane.f32.xlu1 %v235_v31  ;;  %v240_v47 = vshll.u32 %v239_v40, 16 }
 0x338   :  { %v263_v32 = vpop.xlane.xlu1 %262 }
 0x339   :  { %vm264_vm9 = vcmp.eq.f32.partialorder %v261_v18, %v263_v32  ;;  %v269_v48 = vcvt.f32.s32 %v263_v32 }
 0x33a   :  { %v265_v34 = vsel %vm264_vm9, %v260_v33, inf }
 0x33b   :  { %266 = vmin.xlane.f32.xlu1 %v265_v34  ;;  %v270_v59 = vshll.u32 %v269_v48, 16 }
 0x3bb   :  { %v222_v36 = vpop.xlane.xlu0 %221 }
 0x3bc   :  { %v223_v39 = vcvt.f32.s32 %v222_v36 }
 0x3be   :  { %v962_v41 = vadd.s32 %v225_v37, %v223_v39 }
 0x3bf   :  { %v252_v42 = vpop.xlane.xlu0 %251 }
 0x3c0   :  { %v237_v44 = vpop.xlane.xlu1 %236  ;;  %v253_v45 = vcvt.f32.s32 %v252_v42  ;;  %vm272_vm10 = vcmp.eq.s32.totalorder %v948_v58, %v962_v41 }
 0x3c1   :  { %v238_v49 = vcvt.f32.s32 %v237_v44  ;;  %v280_v52 = vsel %vm272_vm10, -inf, %v932_v46 }
 0x3c2   :  { %v970_v53 = vadd.s32 %v255_v43, %v253_v45  ;;  %v284_v54 = vsel %vm145_vm1, %v280_v52, -inf  ;;  %v842_v45 = vmov 1  }
 0x3c3   :  { %v973_v56 = vadd.s32 %v240_v47, %v238_v49  ;;  %285 = vmax.xlane.f32.xlu0 %v284_v54  ;;  %736 = vset.pattern.permute.xlu1 %v842_v45 }
 0x3c4   :  { %v267_v57 = vpop.xlane.xlu1 %266  ;;  %vm274_vm11 = vcmp.eq.s32.totalorder %v948_v58, %v970_v53  ;;  %739 = vset.pattern.permute.xlu0 %v842_v45  ;;  %v528_v53 = vld [vmem:[#allocation2 + $0x50] sm:$0xff] }
 0x3c5   :  { %v268_v60 = vcvt.f32.s32 %v267_v57  ;;  %vm273_vm12 = vcmp.eq.s32.totalorder %v948_v58, %v973_v56  ;;  %v282_v61 = vsel %vm274_vm11, -inf, %v936_v50 }
 0x3c6   :  { %v281_v62 = vsel %vm273_vm12, -inf, %v938_v51  ;;  %v290_v63 = vsel %vm145_vm1, %v282_v61, -inf }
 0x3c7   :  { %v988_v0 = vadd.s32 %v270_v59, %v268_v60  ;;  %v287_v1 = vsel %vm145_vm1, %v281_v62, -inf  ;;  %291 = vmax.xlane.f32.xlu0 %v290_v63  ;;  %v276_v59 = vsel %vm272_vm10, %v932_v46, 0.0 }
 0x3c8   :  { %288 = vmax.xlane.f32.xlu1 %v287_v1 }
 0x3c9   :  { %vm275_vm13 = vcmp.eq.s32.totalorder %v948_v58, %v988_v0 }
 0x3ca   :  { %v283_v3 = vsel %vm275_vm13, -inf, %v944_v55 }
 0x3cb   :  { %v293_v4 = vsel %vm145_vm1, %v283_v3, -inf }
 0x3cc   :  { %294 = vmax.xlane.f32.xlu1 %v293_v4 }
 0x44c   :  { %v286_v8 = vpop.xlane.xlu0 %285 }
 0x44d   :  { %vm296_vm14 = vcmp.eq.f32.partialorder %v280_v52, %v286_v8  ;;  %v277_v8 = vsel %vm273_vm12, %v938_v51, 0.0  ;;  %vm513_vm12 = vcmask 785408  }
 0x44e   :  { %v300_v9 = vsel %vm296_vm14, %v948_v58, 4 }
 0x44f   :  { %v304_v10 = vsel %vm145_vm1, %v300_v9, 2147483647 }
 0x450   :  { %v292_v11 = vpop.xlane.xlu0 %291  ;;  %v306_v12 = vshra.s32 %v304_v10, 16  ;;  %v305_v28 = vand.u32 65535, %v304_v10 }
 0x451   :  { %v289_v13 = vpop.xlane.xlu1 %288  ;;  %vm298_vm15 = vcmp.eq.f32.partialorder %v282_v61, %v292_v11  ;;  %v843_v11 = vmov 2  }
 0x452   :  { %vm297_vm2 = vcmp.eq.f32.partialorder %v281_v62, %v289_v13  ;;  %v302_v14 = vsel %vm298_vm15, %v948_v58, 4  ;;  %v308_v15 = vcvt.s32.f32 %v306_v12  ;;  %v307_v30 = vcvt.s32.f32 %v305_v28 }
 0x453   :  { %v301_v16 = vsel %vm297_vm2, %v948_v58, 4  ;;  %v334_v17 = vsel %vm145_vm1, %v302_v14, 2147483647  ;;  %v844_v13 = vmov 0   ;;  %v845_v14 = vmov 3  }
 0x454   :  { %v319_v18 = vsel %vm145_vm1, %v301_v16, 2147483647  ;;  %309 = vmin.xlane.f32.xlu0 %v308_v15  ;;  %v336_v19 = vshra.s32 %v334_v17, 16  ;;  %v335_v31 = vand.u32 65535, %v334_v17  ;;  %v278_v17 = vsel %vm274_vm11, %v936_v50, 0.0 }
 0x455   :  { %v295_v20 = vpop.xlane.xlu1 %294  ;;  %v321_v21 = vshra.s32 %v319_v18, 16  ;;  %v320_v32 = vand.u32 65535, %v319_v18  ;;  %vm508_vm11 = vcmask 523264  }
 0x456   :  { %vm299_vm3 = vcmp.eq.f32.partialorder %v283_v3, %v295_v20  ;;  %v338_v22 = vcvt.s32.f32 %v336_v19  ;;  %v337_v35 = vcvt.s32.f32 %v335_v31  ;;  %v533_v19 = vld [vmem:[#allocation2 + $0x78] sm:$0xff]  ;;  %v532_v20 = vld [vmem:[#allocation2 + $0x70] sm:$0xff] }
 0x457   :  { %v303_v23 = vsel %vm299_vm3, %v948_v58, 4  ;;  %v323_v24 = vcvt.s32.f32 %v321_v21  ;;  %v322_v37 = vcvt.s32.f32 %v320_v32  ;;  %687 = vmatprep.subr.mxu1 %v533_v19  ;;  %v531_v21 = vld [vmem:[#allocation2 + $0x68] sm:$0xff]  ;;  %v522_v32 = vld [vmem:[#allocation2 + $0x20] sm:$0xff] }
 0x458   :  { %v349_v25 = vsel %vm145_vm1, %v303_v23, 2147483647  ;;  %339 = vmin.xlane.f32.xlu0 %v338_v22  ;;  %688 = vmatpush3.msra.mxu1 %v533_v19  ;;  %v526_v23 = vld [vmem:[#allocation2 + $0x40] sm:$0xff] }
 0x459   :  { %324 = vmin.xlane.f32.xlu1 %v323_v24  ;;  %v351_v26 = vshra.s32 %v349_v25, 16  ;;  %v350_v38 = vand.u32 65535, %v349_v25  ;;  %689 = vmatprep.subr.mxu1 %v532_v20 }
 0x45a   :  { %690 = vmatpush3.msra.mxu1 %v532_v20 }
 0x45b   :  { %v353_v27 = vcvt.s32.f32 %v351_v26  ;;  %v352_v43 = vcvt.s32.f32 %v350_v38  ;;  %691 = vmatprep.subr.mxu1 %v531_v21  ;;  %v524_v26 = vld [vmem:[#allocation2 + $0x30] sm:$0xff]  ;;  %v518_v38 = vld [vmem:[#allocation2] sm:$0xff] }
 0x45c   :  { %692 = vmatpush3.msra.mxu1 %v531_v21 }
 0x45d   :  { %354 = vmin.xlane.f32.xlu1 %v353_v27 }
 0x4dd   :  { %v310_v29 = vpop.xlane.xlu0 %309 }
 0x4de   :  { %vm311_vm4 = vcmp.eq.f32.partialorder %v308_v15, %v310_v29  ;;  %v316_v47 = vcvt.f32.s32 %v310_v29 }
 0x4df   :  { %v312_v33 = vsel %vm311_vm4, %v307_v30, inf  ;;  %v523_v30 = vld [vmem:[#allocation2 + $0x28] sm:$0xff] }
 0x4e0   :  { %313 = vmin.xlane.f32.xlu0 %v312_v33  ;;  %v317_v49 = vshll.u32 %v316_v47, 16 }
 0x4e1   :  { %v1006_v34 = vpop.xlane.xlu0 %339 }
 0x4e2   :  { %v325_v36 = vpop.xlane.xlu1 %324  ;;  %vm341_vm1 = vcmp.eq.f32.partialorder %v338_v22, %v1006_v34  ;;  %v346_v15 = vcvt.f32.s32 %v1006_v34  ;;  %v527_v22 = vld [vmem:[#allocation2 + $0x48] sm:$0xff]  ;;  %v521_v34 = vld [vmem:[#allocation2 + $0x18] sm:$0xff] }
 0x4e3   :  { %vm326_vm5 = vcmp.eq.f32.partialorder %v323_v24, %v325_v36  ;;  %v342_v39 = vsel %vm341_vm1, %v337_v35, inf  ;;  %v331_v54 = vcvt.f32.s32 %v325_v36  ;;  %v525_v24 = vld [vmem:[#allocation2 + $0x38] sm:$0xff]  ;;  %v520_v35 = vld [vmem:[#allocation2 + $0x10] sm:$0xff] }
 0x4e4   :  { %v327_v40 = vsel %vm326_vm5, %v322_v37, inf  ;;  %343 = vmin.xlane.f32.xlu0 %v342_v39  ;;  %v347_v16 = vshll.u32 %v346_v15, 16  ;;  %v519_v37 = vld [vmem:[#allocation2 + $0x8] sm:$0xff] }
 0x4e5   :  { %328 = vmin.xlane.f32.xlu1 %v327_v40  ;;  %v332_v61 = vshll.u32 %v331_v54, 16 }
 0x4e6   :  { %v355_v42 = vpop.xlane.xlu1 %354 }
 0x4e7   :  { %vm356_vm6 = vcmp.eq.f32.partialorder %v353_v27, %v355_v42  ;;  %v361_v62 = vcvt.f32.s32 %v355_v42 }
 0x4e8   :  { %v357_v44 = vsel %vm356_vm6, %v352_v43, inf }
 0x4e9   :  { %358 = vmin.xlane.f32.xlu1 %v357_v44  ;;  %v362_v9 = vshll.u32 %v361_v62, 16 }
 0x569   :  { %v314_v48 = vpop.xlane.xlu0 %313 }
 0x56a   :  { %v315_v52 = vcvt.f32.s32 %v314_v48 }
 0x56c   :  { %v318_v57 = vadd.s32 %v317_v49, %v315_v52 }
 0x56e   :  { %vm364_vm7 = vcmp.eq.s32.totalorder %v948_v58, %v318_v57  ;;  %v329_v60 = vpop.xlane.xlu1 %328 }
 0x56f   :  { %v330_v63 = vcvt.f32.s32 %v329_v60  ;;  %v368_v1 = vsel %vm364_vm7, %v932_v46, %v276_v59  ;;  %v279_v46 = vsel %vm275_vm13, %v944_v55, 0.0 }
 0x570   :  { %397 = vperm.xlu0 %739, %v368_v1  }
 0x571   :  { %v333_v3 = vadd.s32 %v332_v61, %v330_v63 }
 0x572   :  { %v359_v4 = vpop.xlane.xlu1 %358 }
 0x573   :  { %vm365_vm8 = vcmp.eq.s32.totalorder %v948_v58, %v333_v3  ;;  %v360_v41 = vcvt.f32.s32 %v359_v4 }
 0x574   :  { %v369_v10 = vsel %vm365_vm8, %v938_v51, %v277_v8  ;;  %743 = vset.pattern.permute.xlu0 %v843_v11  ;;  %v344_v51 = vpop.xlane.xlu0 %343 }
 0x575   :  { %v363_v12 = vadd.s32 %v362_v9, %v360_v41  ;;  %401 = vperm.xlu1 %736, %v369_v10   ;;  %v345_v0 = vcvt.f32.s32 %v344_v51 }
 0x577   :  { %vm367_vm9 = vcmp.eq.s32.totalorder %v948_v58, %v363_v12 }
 0x578   :  { %v371_v56 = vsel %vm367_vm9, %v944_v55, %v279_v46  ;;  %v348_v55 = vadd.s32 %v347_v16, %v345_v0 }
 0x579   :  { %737 = vset.pattern.permute.xlu1 %v843_v11  ;;  %429 = vperm.xlu0 %743, %v371_v56  }
 0x57a   :  { %421 = vperm.xlu1 %737, %v369_v10   ;;  %vm366_vm10 = vcmp.eq.s32.totalorder %v948_v58, %v348_v55  ;;  %v530_v58 = vld [vmem:[#allocation2 + $0x60] sm:$0xff] }
 0x57b   :  { %v370_v18 = vsel %vm366_vm10, %v936_v50, %v278_v17  ;;  %693 = vmatprep.subr.mxu1 %v530_v58  ;;  %v529_v50 = vld [vmem:[#allocation2 + $0x58] sm:$0xff] }
 0x57c   :  { %694 = vmatpush3.msra.mxu1 %v530_v58 }
 0x57d   :  { %746 = vset.pattern.permute.xlu0 %v844_v13  ;;  %695 = vmatprep.subr.mxu1 %v529_v50 }
 0x57e   :  { %738 = vset.pattern.permute.xlu1 %v845_v14  ;;  %374 = vperm.xlu0 %746, %v368_v1  }
 0x57f   :  { %441 = vperm.xlu1 %738, %v369_v10   ;;  %696 = vmatpush3.msra.mxu1 %v529_v50 }
 0x580   :  { %697 = vmatprep.subr.mxu1 %v528_v53 }
 0x581   :  { %698 = vmatpush3.msra.mxu1 %v528_v53 }
 0x582   :  { %389 = vperm.xlu0 %746, %v371_v56   ;;  %699 = vmatprep.subr.mxu1 %v527_v22 }
 0x583   :  { %740 = vset.pattern.permute.xlu1 %v843_v11  ;;  %700 = vmatpush3.msra.mxu1 %v527_v22 }
 0x584   :  { %417 = vperm.xlu1 %740, %v368_v1   ;;  %701 = vmatprep.subr.mxu1 %v526_v23 }
 0x585   :  { %702 = vmatpush3.msra.mxu1 %v526_v23 }
 0x586   :  { %778 = vset.pattern.permute.xlu0 %v845_v14  ;;  %703 = vmatprep.subr.mxu1 %v525_v24 }
 0x587   :  { %704 = vmatpush3.msra.mxu1 %v525_v24 }
 0x588   :  { %741 = vset.pattern.permute.xlu1 %v845_v14  ;;  %705 = vmatprep.subr.mxu1 %v524_v26 }
 0x589   :  { %437 = vperm.xlu1 %741, %v368_v1   ;;  %706 = vmatpush3.msra.mxu1 %v524_v26 }
 0x58a   :  { %707 = vmatprep.subr.mxu1 %v523_v30 }
 0x58b   :  { %708 = vmatpush3.msra.mxu1 %v523_v30 }
 0x58c   :  { %709 = vmatprep.subr.mxu1 %v522_v32 }
 0x58d   :  { %742 = vset.pattern.permute.xlu1 %v842_v45  ;;  %710 = vmatpush3.msra.mxu1 %v522_v32 }
 0x58e   :  { %409 = vperm.xlu1 %742, %v371_v56   ;;  %711 = vmatprep.subr.mxu1 %v521_v34 }
 0x58f   :  { %712 = vmatpush3.msra.mxu1 %v521_v34 }
 0x590   :  { %713 = vmatprep.subr.mxu1 %v520_v35 }
 0x591   :  { %714 = vmatpush3.msra.mxu1 %v520_v35 }
 0x592   :  { %405 = vperm.xlu1 %742, %v370_v18   ;;  %715 = vmatprep.subr.mxu1 %v519_v37 }
 0x593   :  { %716 = vmatpush3.msra.mxu1 %v519_v37 }
 0x594   :  { %717 = vmatprep.subr.mxu1 %v518_v38 }
 0x595   :  { %718 = vmatpush3.msra.mxu1 %v518_v38 }
 0x596   :  { %744 = vset.pattern.permute.xlu1 %v843_v11 }
 0x597   :  { %425 = vperm.xlu1 %744, %v370_v18  }
 0x59b   :  { %745 = vset.pattern.permute.xlu1 %v845_v14 }
 0x59c   :  { %445 = vperm.xlu1 %745, %v370_v18  }
 0x5a0   :  { %449 = vperm.xlu1 %745, %v371_v56  }
 0x5a4   :  { %747 = vset.pattern.permute.xlu1 %v844_v13 }
 0x5a5   :  { %379 = vperm.xlu1 %747, %v369_v10  }
 0x5a9   :  { %384 = vperm.xlu1 %747, %v370_v18  }
 0x5eb   :  { %v398_v25 = vpop.permute.xlu0 %397 }
 0x5ec   :  { %v412_v28 = vmul.f32 %v398_v25, %v890_v2 }
 0x5f0   :  { %v402_v27 = vpop.permute.xlu1 %401 }
 0x5f1   :  { %v413_v29 = vmul.f32 %v402_v27, %v903_v5 }
 0x5f3   :  { %v748_v31 = vpack.i.bf16 %v413_v29, %v412_v28 }
 0x5f4   :  { %v430_v59 = vpop.permute.xlu0 %429 }
 0x5f5   :  { %v422_v33 = vpop.permute.xlu1 %421  ;;  %749 = vrot.lane.b32.xlu1 %v748_v31, %s846_s0  ;;  %v435_v62 = vmul.f32 %v430_v59, %v917_v7 }
 0x5f6   :  { %v433_v40 = vmul.f32 %v422_v33, %v903_v5 }
 0x5f9   :  { %v375_v11 = vpop.permute.xlu0 %374 }
 0x5fa   :  { %v442_v36 = vpop.permute.xlu1 %441  ;;  %v392_v16 = vmul.f32 %v375_v11, %v890_v2 }
 0x5fb   :  { %v453_v45 = vmul.f32 %v442_v36, %v903_v5 }
 0x5fd   :  { %v390_v46 = vpop.permute.xlu0 %389 }
 0x5fe   :  { %v395_v27 = vmul.f32 %v390_v46, %v917_v7 }
 0x5ff   :  { %v418_v39 = vpop.permute.xlu1 %417 }
 0x600   :  { %v432_v42 = vmul.f32 %v418_v39, %v890_v2 }
 0x602   :  { %v753_v43 = vpack.i.bf16 %v433_v40, %v432_v42 }
 0x604   :  { %v438_v44 = vpop.permute.xlu1 %437  ;;  %754 = vrot.lane.b32.xlu0 %v753_v43, %s847_s2 }
 0x605   :  { %v452_v47 = vmul.f32 %v438_v44, %v890_v2 }
 0x607   :  { %v758_v48 = vpack.i.bf16 %v453_v45, %v452_v47 }
 0x609   :  { %v410_v49 = vpop.permute.xlu1 %409  ;;  %759 = vrot.lane.b32.xlu1 %v758_v48, %s848_s12 }
 0x60a   :  { %v415_v54 = vmul.f32 %v410_v49, %v917_v7 }
 0x60d   :  { %v406_v52 = vpop.permute.xlu1 %405 }
 0x60e   :  { %v414_v57 = vmul.f32 %v406_v52, %v908_v6 }
 0x610   :  { %v763_v60 = vpack.i.bf16 %v415_v54, %v414_v57 }
 0x612   :  { %764 = vrot.lane.b32.xlu0 %v763_v60, %s846_s0  ;;  %v426_v61 = vpop.permute.xlu1 %425 }
 0x613   :  { %v434_v63 = vmul.f32 %v426_v61, %v908_v6 }
 0x615   :  { %v768_v1 = vpack.i.bf16 %v435_v62, %v434_v63 }
 0x617   :  { %v446_v3 = vpop.permute.xlu1 %445  ;;  %769 = vrot.lane.b32.xlu1 %v768_v1, %s847_s2 }
 0x618   :  { %v454_v8 = vmul.f32 %v446_v3, %v908_v6 }
 0x61b   :  { %v450_v4 = vpop.permute.xlu1 %449 }
 0x61c   :  { %v455_v9 = vmul.f32 %v450_v4, %v917_v7 }
 0x61e   :  { %v773_v41 = vpack.i.bf16 %v455_v9, %v454_v8 }
 0x620   :  { %774 = vrot.lane.b32.xlu0 %v773_v41, %s848_s12  ;;  %v380_v10 = vpop.permute.xlu1 %379 }
 0x621   :  { %v393_v55 = vmul.f32 %v380_v10, %v903_v5 }
 0x624   :  { %v385_v12 = vpop.permute.xlu1 %384 }
 0x625   :  { %v394_v28 = vmul.f32 %v385_v12, %v908_v6 }
 0x667   :  { %v750_v56 = vpop.permute.xlu1 %749 }
 0x668   :  { %v752_v14 = vunpack.i.h.bf16 %v750_v56  ;;  %v751_v51 = vunpack.i.l.bf16 %v750_v56 }
 0x66a   :  { %v504_v20 = vsel %vm47_vm0, %v392_v16, %v751_v51  ;;  %v505_v21 = vsel %vm47_vm0, %v393_v55, %v752_v14 }
 0x676   :  { %v755_v13 = vpop.permute.xlu0 %754 }
 0x677   :  { %v757_v15 = vunpack.i.h.bf16 %v755_v13  ;;  %v756_v0 = vunpack.i.l.bf16 %v755_v13 }
 0x679   :  { %v509_v58 = vsel %vm508_vm11, %v504_v20, %v756_v0  ;;  %v510_v50 = vsel %vm508_vm11, %v505_v21, %v757_v15 }
 0x67b   :  { %v760_v17 = vpop.permute.xlu1 %759 }
 0x67c   :  { %v762_v18 = vunpack.i.h.bf16 %v760_v17  ;;  %v761_v19 = vunpack.i.l.bf16 %v760_v17 }
 0x67e   :  { %v514_v53 = vsel %vm513_vm12, %v509_v58, %v761_v19  ;;  %v515_v22 = vsel %vm513_vm12, %v510_v50, %v762_v18 }
 0x67f   :  { %719 = vmatprep.mubr.f32.mxu1 %v514_v53 }
 0x680   :  { %720 = vmatmul.mubr.f32.vlgmr.msra.gmra.mxu1 %v515_v22 }
 0x684   :  { %v765_v2 = vpop.permute.xlu0 %764 }
 0x685   :  { %v767_v23 = vunpack.i.h.bf16 %v765_v2  ;;  %v766_v24 = vunpack.i.l.bf16 %v765_v2 }
 0x687   :  { %v506_v32 = vsel %vm47_vm0, %v394_v28, %v766_v24  ;;  %v507_v33 = vsel %vm47_vm0, %v395_v27, %v767_v23 }
 0x689   :  { %v770_v5 = vpop.permute.xlu1 %769 }
 0x68a   :  { %v772_v25 = vunpack.i.h.bf16 %v770_v5  ;;  %v771_v26 = vunpack.i.l.bf16 %v770_v5 }
 0x68c   :  { %v511_v34 = vsel %vm508_vm11, %v506_v32, %v771_v26  ;;  %v512_v35 = vsel %vm508_vm11, %v507_v33, %v772_v25 }
 0x692   :  { %v775_v29 = vpop.permute.xlu0 %774 }
 0x693   :  { %v777_v30 = vunpack.i.h.bf16 %v775_v29  ;;  %v776_v31 = vunpack.i.l.bf16 %v775_v29 }
 0x695   :  { %v516_v36 = vsel %vm513_vm12, %v511_v34, %v776_v31  ;;  %v517_v37 = vsel %vm513_vm12, %v512_v35, %v777_v30 }
 0x696   :  { %722 = vmatprep.mubr.f32.mxu1 %v516_v36 }
 0x697   :  { %723 = vmatmul.mubr.f32.gmra.mxu1 %v517_v37 }
 0x740   :  { %v721_v7 = vpop.f32.mrf.mxu1 }
 0x741   :  { %620 = vst.msk [vmem:[#allocation5 + $0x8] sm:$0xff] %vm47_vm0, %v721_v7 }
 0x742   :  { %v600_v6 = vpop.f32.mrf.mxu1 }
 0x743   :  { %619 = vst.msk [vmem:[#allocation5] sm:$0xff] %vm47_vm0, %v600_v6 }
 0x757   :  { %v724_v38 = vpop.f32.mrf.mxu1 }
 0x758   :  { %622 = vst.msk [vmem:[#allocation5 + $0x18] sm:$0xff] %vm47_vm0, %v724_v38 }
 0x759   :  { %v610_v39 = vpop.f32.mrf.mxu1 }
 0x75a   :  { %621 = vst.msk [vmem:[#allocation5 + $0x10] sm:$0xff] %vm47_vm0, %v610_v39 }
 0x75b   :  { %826 = shalt.err (!%p823_p9)
}
 0x75c   :  { %634 = dma.vmem_to_hbm [thread:$0]  %s629_s14, 512, %s1078_s4, [#allocation4], %s840_s18, %s840_s18, %s841_s19  }
 0x75d   :  { %837 = dma.done.wait [#allocation4], 512  }
 0x75e   :  { %838 = vsyncadd [#allocation4], 4294966784 }
 0x75f   :  { %638 = vsyncpa [#allocation3], 1 }
 0x760   :  { %639 = vsyncpa [#allocation4], 1 }

</bundles_post_ra>
